<compile_context>
chip_gen: v6e
topology: v6e:2x2x1
jax: 0.10.0
libtpu: 0.0.40
codegen_flags: <defaults>
</compile_context>

<pallas_src>
import functools
import math

import jax
import jax.numpy as jnp
from jax.experimental import pallas as pl
from jax.experimental.pallas import tpu as pltpu


# ---------------------------------------------------------------------------
# Tile-size heuristics (VMEM-safe on v7x's 64 MiB as well as v5e/v6e's 128 MiB)
# ---------------------------------------------------------------------------

def _pick_row_tile(n):
    # MXU/sublane aligned (multiple of 8 for f32), capped so x/out tiles stay small,
    # chosen so the row axis has >= 2 grid steps whenever possible (pipelining).
    for t in (256, 128, 64, 32, 16, 8):
        if n >= 2 * t:
            return t
    return 8


def _pick_col_tile(f):
    # Lane-dense (multiple of 128) output-column tile when the feature dim allows;
    # otherwise take the whole feature dim (block == full dim is always legal).
    for t in (512, 256, 128):
        if f % t == 0 and f > t:
            return t
    return f


def _pick_bh_tile(bh):
    # Batch*heads tile for the attention kernel: largest divisor that still leaves
    # >= 2 grid steps so q/k/v tiles are pipelined against compute.
    for t in (16, 8, 4, 2, 1):
        if bh % t == 0 and bh // t >= 2:
            return t
    return bh


# ---------------------------------------------------------------------------
# Linear (matmul + bias) kernel, used for qkv_proj and out_proj
# ---------------------------------------------------------------------------

def _linear_kernel(x_ref, w_ref, b_ref, o_ref, *, compute_dtype):
    # x tile arrives f32; cast to the MXU compute dtype (bf16) for the matmul,
    # accumulate in f32 (preferred_element_type), add bias in f32.
    x = x_ref[...].astype(compute_dtype)
    acc = jnp.dot(x, w_ref[...], preferred_element_type=jnp.float32)
    o_ref[...] = (acc + b_ref[...]).astype(o_ref.dtype)


def linear_pallas(x2d, w, b, *, compute_dtype=jnp.bfloat16):
    """x2d: (N, K) f32.  w: (K, F).  b: (F,).  Returns (N, F) in x2d.dtype."""
    n, k = x2d.shape
    kw, f = w.shape
    assert k == kw, "weight / activation inner dims mismatch"

    row_tile = _pick_row_tile(n)
    pad = (-n) % row_tile                      # handle N not divisible by the tile
    if pad:
        x2d = jnp.pad(x2d, ((0, pad), (0, 0)))
    n_pad = n + pad
    col_tile = _pick_col_tile(f)

    w_c = w.astype(compute_dtype)              # cast weights once: half DMA / VMEM
    b_2d = b.reshape(1, f).astype(jnp.float32)

    # cols outer, rows inner: each weight column chunk is fetched once and reused
    # across the inner row sweep (weights dominate HBM bytes for projections).
    grid = (f // col_tile, n_pad // row_tile)

    itemsize = jnp.dtype(compute_dtype).itemsize
    cost = pl.CostEstimate(
        flops=2 * n_pad * k * f,
        transcendentals=0,
        bytes_accessed=n_pad * k * 4 + k * f * itemsize + f * 4 + n_pad * f * 4,
    )

    out = pl.pallas_call(
        functools.partial(_linear_kernel, compute_dtype=compute_dtype),
        out_shape=jax.ShapeDtypeStruct((n_pad, f), x2d.dtype),
        grid_spec=pltpu.PrefetchScalarGridSpec(
            num_scalar_prefetch=0,
            grid=grid,
            in_specs=[
                pl.BlockSpec((row_tile, k), lambda j, i: (i, 0)),   # x row tile
                pl.BlockSpec((k, col_tile), lambda j, i: (0, j)),   # W column chunk
                pl.BlockSpec((1, col_tile), lambda j, i: (0, j)),   # bias chunk
            ],
            out_specs=pl.BlockSpec((row_tile, col_tile), lambda j, i: (i, j)),
        ),
        compiler_params=pltpu.CompilerParams(
            dimension_semantics=("parallel", "parallel"),
        ),
        cost_estimate=cost,
    )(x2d, w_c, b_2d)

    return out[:n] if pad else out


# ---------------------------------------------------------------------------
# Multi-head scaled-dot-product attention kernel
# ---------------------------------------------------------------------------

def _attention_kernel(q_ref, k_ref, v_ref, o_ref, w_ref, *, scale, compute_dtype):
    # Blocks are (bh_tile, S, Dh) / (bh_tile, S, S): a tile of batch*head slices.
    q = q_ref[...].astype(compute_dtype)
    k = k_ref[...].astype(compute_dtype)
    v = v_ref[...].astype(compute_dtype)

    # scores = q @ k^T / sqrt(d_k)   (f32 accumulation on the MXU)
    s = jnp.einsum("bqd,bkd->bqk", q, k,
                   preferred_element_type=jnp.float32) * scale
    # TODO(synk): optional attention mask (scores.masked_fill(mask == 0, -1e9)) is
    # not wired in; the demo / default forward uses mask=None.

    # numerically-stable softmax, fully in f32
    m = jnp.max(s, axis=-1, keepdims=True)
    e = jnp.exp(s - m)
    p = e / jnp.sum(e, axis=-1, keepdims=True)
    # nn.Dropout on the attention weights is the identity in eval/inference mode.
    # TODO(synk): training-mode dropout would use pltpu.prng_seed/prng_random_bits.

    o = jnp.einsum("bqk,bkd->bqd", p.astype(compute_dtype), v,
                   preferred_element_type=jnp.float32)

    o_ref[...] = o.astype(o_ref.dtype)
    w_ref[...] = p.astype(w_ref.dtype)


def mha_attention_pallas(q, k, v, *, compute_dtype=jnp.bfloat16):
    """q, k, v: (B*H, S, Dh) f32.  Returns ((B*H, S, Dh) context, (B*H, S, S) weights)."""
    bh, s, dh = q.shape
    bh_tile = _pick_bh_tile(bh)
    grid = (bh // bh_tile,)
    scale = 1.0 / math.sqrt(dh)

    cost = pl.CostEstimate(
        flops=4 * bh * s * s * dh,               # q@k^T and p@v
        transcendentals=bh * s * s,              # exp in the softmax
        bytes_accessed=3 * bh * s * dh * 4 + bh * s * dh * 4 + bh * s * s * 4,
    )

    qkv_spec = pl.BlockSpec((bh_tile, s, dh), lambda i: (i, 0, 0))
    out, attn = pl.pallas_call(
        functools.partial(_attention_kernel, scale=scale, compute_dtype=compute_dtype),
        out_shape=(
            jax.ShapeDtypeStruct((bh, s, dh), q.dtype),
            jax.ShapeDtypeStruct((bh, s, s), jnp.float32),
        ),
        grid_spec=pltpu.PrefetchScalarGridSpec(
            num_scalar_prefetch=0,
            grid=grid,
            in_specs=[qkv_spec, qkv_spec, qkv_spec],
            out_specs=[
                pl.BlockSpec((bh_tile, s, dh), lambda i: (i, 0, 0)),
                pl.BlockSpec((bh_tile, s, s), lambda i: (i, 0, 0)),
            ],
        ),
        compiler_params=pltpu.CompilerParams(
            dimension_semantics=("parallel",),
        ),
        cost_estimate=cost,
    )(q, k, v)
    return out, attn


# ---------------------------------------------------------------------------
# Module forward (self-attention path of EfficientAttention)
# ---------------------------------------------------------------------------

def efficient_attention_forward(params, x, *, num_heads, compute_dtype=jnp.bfloat16):
    """x: (B, S, E).  Returns (output (B,S,E), attention_weights (B,H,S,S))."""
    b, s, e = x.shape
    h = num_heads
    assert e % h == 0, "embed_dim must be divisible by num_heads"
    dh = e // h

    # qkv projection (fused matmul + bias kernel)
    qkv = linear_pallas(x.reshape(b * s, e), params["wqkv"], params["bqkv"],
                        compute_dtype=compute_dtype)
    # (B,S,3,H,Dh) -> (3,B,H,S,Dh): layout plumbing stays in XLA (not compute).
    qkv = qkv.reshape(b, s, 3, h, dh).transpose(2, 0, 3, 1, 4)
    q_h, k_h, v_h = qkv[0], qkv[1], qkv[2]

    # multi-head scaled-dot-product attention over (batch*heads) tiles
    o, attn = mha_attention_pallas(
        q_h.reshape(b * h, s, dh),
        k_h.reshape(b * h, s, dh),
        v_h.reshape(b * h, s, dh),
        compute_dtype=compute_dtype,
    )
    attn = attn.reshape(b, h, s, s)

    # merge heads, output projection kernel
    o = o.reshape(b, h, s, dh).transpose(0, 2, 1, 3).reshape(b * s, e)
    out = linear_pallas(o, params["wout"], params["bout"], compute_dtype=compute_dtype)
    # TODO(synk): cross-attention path (explicit k/v tensors) is not exposed here;
    # the torch default forward(q) self-attention path is implemented.
    return out.reshape(b, s, e), attn


# ---------------------------------------------------------------------------
# Parameter init (mirrors the torch __init__) and a pure-JAX reference
# ---------------------------------------------------------------------------

def _xavier_uniform(key, fan_in, fan_out, dtype=jnp.float32):
    # torch.nn.init.xavier_uniform_ (gain=1): U(-a, a), a = sqrt(6/(fan_in+fan_out))
    a = math.sqrt(6.0 / (fan_in + fan_out))
    return jax.random.uniform(key, (fan_in, fan_out), dtype=dtype, minval=-a, maxval=a)


def init_params(key, embed_dim):
    k1, k2 = jax.random.split(key)
    return dict(
        wqkv=_xavier_uniform(k1, embed_dim, 3 * embed_dim),  # stored (E, 3E) = torch W^T
        bqkv=jnp.zeros((3 * embed_dim,), jnp.float32),
        wout=_xavier_uniform(k2, embed_dim, embed_dim),       # stored (E, E)  = torch W^T
        bout=jnp.zeros((embed_dim,), jnp.float32),
    )


def reference_forward(params, x, *, num_heads, compute_dtype=jnp.bfloat16):
    # Pure-JAX mirror of the torch forward, using the same bf16 matmul inputs /
    # f32 accumulation as the kernels so the check isolates kernel correctness.
    b, s, e = x.shape
    h = num_heads
    dh = e // h
    cd = compute_dtype

    qkv = jnp.dot(x.reshape(b * s, e).astype(cd), params["wqkv"].astype(cd),
                  preferred_element_type=jnp.float32) + params["bqkv"]
    qkv = qkv.reshape(b, s, 3, h, dh).transpose(2, 0, 3, 1, 4)
    q, k, v = qkv[0], qkv[1], qkv[2]

    scale = 1.0 / math.sqrt(dh)
    sc = jnp.einsum("bhqd,bhkd->bhqk", q.astype(cd), k.astype(cd),
                    preferred_element_type=jnp.float32) * scale
    p = jax.nn.softmax(sc, axis=-1)
    o = jnp.einsum("bhqk,bhkd->bhqd", p.astype(cd), v.astype(cd),
                   preferred_element_type=jnp.float32)
    o = o.transpose(0, 2, 1, 3).reshape(b * s, e)
    out = jnp.dot(o.astype(cd), params["wout"].astype(cd),
                  preferred_element_type=jnp.float32) + params["bout"]
    return out.reshape(b, s, e), p


if __name__ == "__main__":
    key = jax.random.PRNGKey(0)
    k_x, k_p = jax.random.split(key)

    # Small demo shapes, chosen MXU/lane-friendly: embed_dim is a multiple of 128 so
    # projection outputs are lane-dense (unmasked vector stores).
    batch, seq, embed_dim, num_heads = 2, 8, 128, 4

    x = jax.random.normal(k_x, (batch, seq, embed_dim), dtype=jnp.float32)
    params = init_params(k_p, embed_dim)

    out, attn = efficient_attention_forward(params, x, num_heads=num_heads)
    out, attn = jax.block_until_ready((out, attn))

    assert out.shape == (batch, seq, embed_dim)
    assert attn.shape == (batch, num_heads, seq, seq)

    ref_out, ref_attn = reference_forward(params, x, num_heads=num_heads)
    assert jnp.allclose(out, ref_out, atol=2e-3, rtol=2e-3), "output mismatch vs reference"
    assert jnp.allclose(attn, ref_attn, atol=2e-3, rtol=2e-3), "attn weights mismatch vs reference"
    assert jnp.allclose(jnp.sum(attn, axis=-1), 1.0, atol=1e-3), "softmax rows must sum to 1"

    print("KERNEL_OK")
</pallas_src>

<mosaic_0001>
module attributes {stable_mosaic.version = 11 : i64} {
  func.func @_linear_kernel(%arg0: i32, %arg1: i32, %arg2: memref<8x128xf32, #tpu.memory_space<vmem>>, %arg3: memref<128x128xbf16, #tpu.memory_space<vmem>>, %arg4: memref<1x128xf32, #tpu.memory_space<vmem>>, %arg5: memref<8x128xf32, #tpu.memory_space<vmem>>) attributes {dimension_semantics = [#tpu.dimension_semantics<parallel>, #tpu.dimension_semantics<parallel>], iteration_bounds = array<i64: 3, 2>, scalar_prefetch = 0 : i64, scratch_operands = 0 : i64, tpu.core_type = #tpu.core_type<tc>, window_params = [{transform_indices = @transform_0, window_bounds = array<i64: 8, 128>}, {transform_indices = @transform_1, window_bounds = array<i64: 128, 128>}, {transform_indices = @transform_2, window_bounds = array<i64: 1, 128>}, {transform_indices = @transform_3, window_bounds = array<i64: 8, 128>}]} {
    %c0 = arith.constant 0 : index
    %c0_0 = arith.constant 0 : index
    %0 = vector.load %arg2[%c0, %c0_0] : memref<8x128xf32, #tpu.memory_space<vmem>>, vector<8x128xf32>
    %1 = arith.truncf %0 : vector<8x128xf32> to vector<8x128xbf16>
    %c0_1 = arith.constant 0 : index
    %c0_2 = arith.constant 0 : index
    %2 = vector.load %arg3[%c0_1, %c0_2] : memref<128x128xbf16, #tpu.memory_space<vmem>>, vector<128x128xbf16>
    %cst = arith.constant dense<0.000000e+00> : vector<8x128xf32>
    %3 = tpu.matmul %1, %2, %cst {dimension_numbers = #tpu.dot_dimension_numbers<[1], [0], [0], [1], [0, 0, 1, 1], [], []>} : vector<8x128xbf16>, vector<128x128xbf16>, vector<8x128xf32> -> vector<8x128xf32>
    %c0_3 = arith.constant 0 : index
    %c0_4 = arith.constant 0 : index
    %4 = vector.load %arg4[%c0_3, %c0_4] : memref<1x128xf32, #tpu.memory_space<vmem>>, vector<1x128xf32>
    %5 = vector.broadcast %4 : vector<1x128xf32> to vector<8x128xf32>
    %6 = arith.addf %3, %5 : vector<8x128xf32>
    %c0_5 = arith.constant 0 : index
    %c0_6 = arith.constant 0 : index
    %7 = vector.load %arg5[%c0_5, %c0_6] : memref<8x128xf32, #tpu.memory_space<vmem>>, vector<8x128xf32>
    tpu.vector_store %arg5[%c0_5, %c0_6], %6 {strides = array<i32>} : memref<8x128xf32, #tpu.memory_space<vmem>>, vector<8x128xf32>,
    return
  }
  func.func @transform_0(%arg0: i32, %arg1: i32) -> (i32, i32) {
    %c0_i32 = arith.constant 0 : i32
    %c0_i32_0 = arith.constant 0 : i32
    return %arg1, %c0_i32 : i32, i32
  }
  func.func @transform_1(%arg0: i32, %arg1: i32) -> (i32, i32) {
    %c0_i32 = arith.constant 0 : i32
    %c0_i32_0 = arith.constant 0 : i32
    return %c0_i32, %arg0 : i32, i32
  }
  func.func @transform_2(%arg0: i32, %arg1: i32) -> (i32, i32) {
    %c0_i32 = arith.constant 0 : i32
    %c0_i32_0 = arith.constant 0 : i32
    return %c0_i32, %arg0 : i32, i32
  }
  func.func @transform_3(%arg0: i32, %arg1: i32) -> (i32, i32) {
    %c0_i32 = arith.constant 0 : i32
    return %arg1, %arg0 : i32, i32
  }
}

</mosaic_0001>

<bundles_post_ra>
// kernel: tpu_custom_call.1
= control target key start
LH: loop header
LB: loop body
LE: loop exit
PB: predicated region body
PF: predicated region fallthrough
CT: control target
= control target key end

     0   :  { %s1216_s0 = inlined_call_operand.hbm [shape: f32[16,128], index: 0, kind: input, shape index: {}]   ;;  %s1217_s1 = inlined_call_operand.hbm [shape: bf16[128,384], index: 1, kind: input, shape index: {}]   ;;  %s1218_s2 = inlined_call_operand.vmem [shape: f32[1,384], index: 2, kind: input, shape index: {}]   ;;  %s1219_s3 = inlined_call_operand.hbm [shape: f32[16,384], index: 3, kind: output, shape index: {}]  }
   0x1   :  { %1227 = sst [smem:[#allocation19_spill]] %s1216_s0 }
   0x2   :  { %8 = vsyncpa [#allocation3], 0 }
   0x3   :  { %10 = vsyncpa [#allocation3 + $0x1], 0 }
   0x4   :  { %11 = vsyncpa [#allocation6], 0 }
   0x5   :  { %13 = vsyncpa [#allocation6 + $0x1], 0 }
   0x6   :  { %14 = vsyncpa [#allocation4], 0 }
   0x7   :  { %16 = vsyncpa [#allocation4 + $0x1], 0  ;;  %s932_s12 = smov 0   ;;  %s934_s13 = smov 0  }
   0x8   :  { %s936_s14 = smov 0   ;;  %s938_s15 = smov 0  }
   0x9   :  { %s940_s16 = smov 0   ;;  %s942_s17 = smov 0  }
   0xa   :  { %s944_s18 = smov 0   ;;  %s946_s19 = smov 0  }
   0xb   :  { %s948_s20 = smov 0   ;;  %s950_s21 = smov 0  }
   0xc   :  { %s952_s22 = smov 0   ;;  %s954_s23 = smov 0  }
   0xd   :  { %s956_s24 = smov 0   ;;  %s958_s25 = smov 0  }
   0xe LB: > { %1228 = sst [smem:[#allocation11_spill]] %s858_s14  ;;  %s499_s26 = sadd.s32 4294967295, %s902_s25   ;;  %s902_s25 = sphi %s958_s25, %s22_s25   ;;  %s898_s24 = sphi %s956_s24, %s1267_s24   ;;  %s894_s23 = sphi %s954_s23, %s1257_s23   ;;  %s890_s22 = sphi %s952_s22, %s1266_s22   ;;  %s886_s21 = sphi %s950_s21, %s1256_s21   ;;  %s882_s20 = sphi %s948_s20, %s1255_s20   ;;  %s878_s19 = sphi %s946_s19, %s1265_s19   ;;  %s874_s18 = sphi %s944_s18, %s1264_s18   ;;  %s870_s17 = sphi %s942_s17, %s1263_s17   ;;  %s866_s16 = sphi %s940_s16, %s1262_s16   ;;  %s862_s15 = sphi %s938_s15, %s1261_s15   ;;  %s858_s14 = sphi %s936_s14, %s1252_s14   ;;  %s854_s13 = sphi %s934_s13, %s1260_s13   ;;  %s850_s12 = sphi %s932_s12, %s1259_s12  }
   0xf   : > { %1229 = sst [smem:[#allocation12_spill]] %s882_s20  ;;  %s31_s28 = sadd.s32 1, %s894_s23 }
  0x10   : > { %1230 = sst [smem:[#allocation13_spill]] %s894_s23  ;;  %s34_s29 = sadd.s32 1, %s898_s24 }
  0x11   : > { %p32_p0 = scmp.ge.s32.totalorder %s31_s28, 2  ;;  %s41_s30 = sadd.s32 1, %s882_s20 }
  0x12   : > { %p48_p1 = scmp.ne.s32.totalorder %s882_s20, %s878_s19  ;;  %p49_p2 = scmp.eq.s32.totalorder %s902_s25, 0 }
  0x13   : > { %s1269_s28 = smov (%p32_p0, %s31_s28), 0  ;;  %s1271_s29 = smov (!%p32_p0, %s34_s29), %s898_s24 }
  0x14   : > { %1231 = sst [smem:[#allocation14_spill]] %s1269_s28  ;;  %s38_s4 = ssub.s32 %s894_s23, %s1269_s28 }
  0x15   : > { %p1015_p3 = por %p49_p2, %p48_p1  ;;  %p36_p4 = scmp.ge.s32.totalorder %s1271_s29, 3 }
  0x16   : > { %p39_p5 = scmp.eq.s32.totalorder %s38_s4, 0  ;;  %p54_p6 = scmp.ne.s32.totalorder %s878_s19, %s874_s18 }
  0x17   : > { %p55_p7 = scmp.eq.s32.totalorder %s499_s26, 0  ;;  %s1273_s29 = smov (%p36_p4, %s1271_s29), 0 }
  0x18   : > { %1233 = sst [smem:[#allocation15_spill]] %s1273_s29  ;;  %s64_s8 = ssub.s32 %s898_s24, %s1273_s29 }
  0x19   : > { %s1025_s6 = scalar_select %p39_p5, %s882_s20, %s41_s30  }
  0x1a   : > { %p1027_p8 = por %p55_p7, %p54_p6  ;;  %p65_p9 = scmp.eq.s32.totalorder %s64_s8, 0 }
  0x1b   : > { %1234 = sst [smem:[#allocation16_spill]] %s1025_s6  ;;  %s67_s9 = sadd.s32 1, %s870_s17 }
  0x1c   : > { %p74_p10 = scmp.ne.s32.totalorder %s870_s17, %s866_s16  ;;  %p80_p11 = scmp.ne.s32.totalorder %s866_s16, %s862_s15 }
  0x1d   : > { %s1039_s10 = scalar_select %p65_p9, %s870_s17, %s67_s9  }
  0x1e   : > { %p1043_p12 = por %p74_p10, %p49_p2  ;;  %p1047_p13 = por %p80_p11, %p55_p7 }
  0x1f   : > { %1236 = sst [smem:[#allocation17_spill]] %s1039_s10  ;;  %s118_s30 = sor.u32 %s64_s8, %s38_s4 }
  0x20   : > { %s1238_s18 = scalar_select %p1047_p13, 1, 0 }
  0x21   : > { %s121_s27 = sadd.s32 1, %s858_s14  ;;  %p119_p0 = scmp.eq.s32.totalorder %s118_s30, 0 }
  0x22   : > { %p131_p1 = scmp.ne.s32.totalorder %s858_s14, %s854_s13  ;;  %p132_p4 = scmp.eq.s32.totalorder %s499_s26, 5 }
  0x23   : > { %p137_p5 = scmp.ne.s32.totalorder %s854_s13, %s850_s12  ;;  %s1241_s29 = sadd.s32 4294967294, %s902_s25  }
  0x24   : > { %s1059_s15 = scalar_select %p119_p0, %s858_s14, %s121_s27  }
  0x25   : > { %p1061_p2 = por %p132_p4, %p131_p1  ;;  %p138_p6 = scmp.eq.s32.totalorder %s1241_s29, 5 }
  0x26   : > { %1239 = sst [smem:[#allocation18_spill]] %s1059_s15  ;;  %p571_p7 = scmp.lt.s32.totalorder %s902_s25, 6 }
  0x27   : > { %s1240_s9 = scalar_select %p1061_p2, 1, 0 }
  0x28   : > { %p1068_p9 = por %p138_p6, %p137_p5  ;;  %s158_s8 = sand.u32 1, %s882_s20  }
  0x29   : > { %s503_s30 = sshll.u32 %s158_s8, 3  ;;  %s504_s28 = sshll.u32 %s894_s23, 7 }
  0x2a   : > { %s1242_s4 = scalar_select %p1068_p9, 1, 0 }
  0x2b   : > { %s1243_s0 = sld [smem:[#allocation19_spill]]  ;;  %s162_s27 = scalar_lea.vmem [#allocation2], %s503_s30 }
  0x2c   : > { %s169_s15 = sshll.u32 %s162_s27, 4  ;;  %p1079_p10 = pnand %p571_p7, %p1015_p3  ;;  %s170_s15 = int_to_ptr.vmem [resolvable:$true] %s169_s15 }
  0x2d   : > { %p1085_p11 = pnand %p571_p7, %p1043_p12  ;;  %p507_p0 = scmp.ge.s32.totalorder %s902_s25, 1 }
  0x2e   : > { %p200_p1 = scmp.lt.s32.totalorder %s902_s25, 7  ;;  %s159_s23 = scalar_lea.sflag [#allocation3], %s158_s8 }
  0x2f   : > { %p700_p4 = pneg %p1079_p10  ;;  %s904_s5 = smov [#allocation2]  }
  0x30   : > { %s716_s6 = sshll.u32 %s904_s5, 4  ;;  %s717_s6 = int_to_ptr.vmem [resolvable:$false] %s716_s6 }
  0x31   : > { %s167_s10 = scalar_lea.hbm %s1243_s0, %s504_s28  ;;  %s711_s28 = scalar_lea.vmem %s170_s15, 128 }
  0x32   : > { %p712_p5 = scmp.ne.s32.totalorder %s170_s15, %s711_s28  ;;  %s718_s30 = scalar_lea.vmem %s717_s6, 256 }
  0x33   : > { %p719_p3 = scmp.lt.s32.totalorder %s170_s15, %s717_s6  ;;  %p720_p2 = scmp.lt.s32.totalorder %s718_s30, %s711_s28 }
  0x34   : > { %p714_p6 = pnand %p712_p5, %p700_p4 }
  0x35   : > { %p721_p13 = por %p720_p2, %p719_p3 }
  0x36   : > { %p715_p9 = pneg %p714_p6 }
  0x38   : > { %p722_p12 = pnand %p721_p13, %p715_p9 }
  0x3a   : > { %725 = shalt.err (!%p722_p12)
}
  0x3b   : > { %563 = dma.hbm_to_vmem [thread:$0]  (!%p1079_p10), %s167_s10, 128, %s170_s15, %s159_s23  }
  0x3c   : > { %p1099_p7 = pnand %p507_p0, %p200_p1  ;;  %s176_s8 = sand.u32 1, %s870_s17  }
  0x3d   : > { %s506_s26 = sshll.u32 %s898_s24, 6  ;;  %s505_s27 = sshll.u32 %s176_s8, 6 }
  0x3e   : > { %s185_s6 = scalar_lea.hbm %s1217_s1, %s506_s26  ;;  %s180_s14 = scalar_lea.vmem [#allocation5], %s505_s27 }
  0x3f   : > { %s186_s30 = sshll.u32 %s180_s14, 4  ;;  %s177_s0 = scalar_lea.sflag [#allocation6], %s176_s8  ;;  %s187_s30 = int_to_ptr.vmem [resolvable:$true] %s186_s30 }
  0x40   : > { %p728_p13 = pneg %p1085_p11  ;;  %s739_s23 = scalar_lea.vmem %s187_s30, 1024 }
  0x41   : > { %p740_p2 = scmp.ne.s32.totalorder %s187_s30, %s739_s23  ;;  %s905_s10 = smov [#allocation5]  }
  0x42   : > { %s744_s15 = sshll.u32 %s905_s10, 4  ;;  %s745_s15 = int_to_ptr.vmem [resolvable:$false] %s744_s15 }
  0x43   : > { %p742_p9 = pnand %p740_p2, %p728_p13  ;;  %s746_s20 = scalar_lea.vmem %s745_s15, 2048 }
  0x44   : > { %p747_p0 = scmp.lt.s32.totalorder %s187_s30, %s745_s15  ;;  %p748_p1 = scmp.lt.s32.totalorder %s746_s20, %s739_s23 }
  0x45   : > { %p743_p10 = pneg %p742_p9 }
  0x46   : > { %p749_p4 = por %p748_p1, %p747_p0 }
  0x48   : > { %p750_p5 = pnand %p749_p4, %p743_p10 }
  0x4a   : > { %753 = shalt.err (!%p750_p5)
}
  0x4b   : > { %s906_s26 = smov 192   ;;  %s907_s27 = smov 64  }
  0x4c   : > { %s908_s28 = smov 4   ;;  %204 = sbr.rel (%p1099_p7) target bundleno = 328 (0x148), region = 32 }
  0x4d   : > { %566 = dma.hbm_to_vmem [thread:$0]  (!%p1085_p11), %s185_s6, 1024, %s187_s30, %s177_s0, %s906_s26, %s907_s27, %s908_s28  }
  0x4e   : > { %s206_s8 = sand.u32 (!%p1099_p7), 1, %s878_s19  }
  0x4f   : > { %s1115_s5 = sshll.u32 (!%p1099_p7), %s206_s8, 3  ;;  %s207_s14 = scalar_lea.sflag (!%p1099_p7), [#allocation3], %s206_s8 }
  0x50   : > { %s210_s20 = scalar_lea.vmem (!%p1099_p7), [#allocation2], %s1115_s5 }
  0x51   : > { %837 = dma.done.wait (%p1027_p8), %s207_s14, 128  }
  0x52   : > { %839 = vsyncadd (%p1027_p8), %s207_s14, 4294967168  ;;  %s215_s29 = sand.u32 1, %s866_s16   ;;  %p1247_p11 = scmp.ne.s32.totalorder %s1238_s18, 0 }
  0x53   : > { %s509_s0 = sshll.u32 %s215_s29, 6  ;;  %s216_s6 = scalar_lea.sflag [#allocation6], %s215_s29 }
  0x54   : > { %s219_s11 = scalar_lea.vmem [#allocation5], %s509_s0 }
  0x55   : > { %841 = dma.done.wait (%p1247_p11), %s216_s6, 1024  }
  0x56   : > { %843 = vsyncadd (%p1247_p11), %s216_s6, 4294966272  ;;  %v909_v0 = vmov 0.0   ;;  %vm910_vm0 = vmmov 0   ;;  %v690_v1 = vld [vmem:[%s219_s11 + $0x38] sm:$0xff]   ;;  %v691_v2 = vld [vmem:[%s219_s11 + $0x30] sm:$0xff]   ;;  %p250_p8 = scmp.lt.s32.totalorder %s890_s22, 2 }
  0x57   : > { %533 = vmatprep.subr.bf16.mxu0 %v909_v0  ;;  %549 = vmatprep.mubr.msk.bf16.mxu0 %vm910_vm0, %v909_v0  ;;  %v692_v3 = vld [vmem:[%s219_s11 + $0x28] sm:$0xff]   ;;  %v693_v4 = vld [vmem:[%s219_s11 + $0x20] sm:$0xff]   ;;  %v694_v5 = vld [vmem:[%s219_s11 + $0x18] sm:$0xff]   ;;  %s247_s7 = sand.u32 1, %s854_s13   ;;  %s553_s23 = smul.u32 3, %s886_s21 }
  0x58   : > { %534 = vmatpush3.bf16.msra.mxu0 %v690_v1  ;;  %v695_v6 = vld [vmem:[%s219_s11 + $0x10] sm:$0xff]   ;;  %v696_v7 = vld [vmem:[%s219_s11 + $0x8] sm:$0xff]   ;;  %v697_v8 = vld [vmem:[%s219_s11] sm:$0xff]   ;;  %s251_s18 = scalar_select %p250_p8, %s890_s22, 2 }
  0x59   : > { %535 = vmatprep.subr.bf16.mxu0 %v909_v0  ;;  %v254_v9 = vld [vmem:[%s210_s20] sm:$0xff]  ;;  %s510_s30 = sshll.u32 %s247_s7, 3  ;;  %s380_s27 = sadd.s32 %s890_s22, %s553_s23 }
  0x5a   : > { %v255_v10 = vpack.c.bf16 %v254_v9, %v254_v9  ;;  %s252_s26 = scalar_lea.vmem %s1218_s2, %s251_s18  ;;  %s521_s28 = sshll.u32 %s380_s27, 7 }
  0x5b   : > { %v511_v11 = vld [vmem:[%s252_s26] ss:$0 sm:$0xff]  ;;  %s249_s8 = scalar_lea.vmem [#allocation7], %s510_s30  ;;  %s1140_s29 = scalar_lea.hbm %s1219_s3, %s521_s28 }
  0x5c   : > { %536 = vmatpush3.bf16.msra.mxu0 %v691_v2  ;;  %s384_s5 = sshll.u32 %s249_s8, 4  ;;  %s369_s21 = scalar_lea.sflag [#allocation4], %s247_s7  ;;  %s1142_s5 = int_to_ptr.vmem [resolvable:$true] %s384_s5 }
  0x5d   : > { %537 = vmatprep.subr.bf16.mxu0 %v909_v0  ;;  %s754_s22 = scalar_lea.vmem %s1142_s5, 128  ;;  %p1248_p3 = scmp.ne.s32.totalorder %s1240_s9, 0 }
  0x5e   : > { %p755_p6 = scmp.ne.s32.totalorder %s1142_s5, %s754_s22  ;;  %s911_s0 = smov [#allocation7]  }
  0x5f   : > { %s758_s6 = sshll.u32 %s911_s0, 4  ;;  %s759_s6 = int_to_ptr.vmem [resolvable:$false] %s758_s6 }
  0x60   : > { %538 = vmatpush3.bf16.msra.mxu0 %v692_v3  ;;  %p756_p12 = pnand %p755_p6, %p1248_p3  ;;  %s760_s11 = scalar_lea.vmem %s759_s6, 256 }
  0x61   : > { %539 = vmatprep.subr.bf16.mxu0 %v909_v0  ;;  %p761_p13 = scmp.lt.s32.totalorder %s1142_s5, %s759_s6  ;;  %p762_p2 = scmp.lt.s32.totalorder %s760_s11, %s754_s22 }
  0x62   : > { %p757_p7 = pneg %p756_p12 }
  0x63   : > { %p763_p9 = por %p762_p2, %p761_p13 }
  0x64   : > { %540 = vmatpush3.bf16.msra.mxu0 %v693_v4 }
  0x65   : > { %541 = vmatprep.subr.bf16.mxu0 %v909_v0  ;;  %p764_p10 = pnand %p763_p9, %p757_p7 }
  0x68   : > { %542 = vmatpush3.bf16.msra.mxu0 %v694_v5 }
  0x69   : > { %543 = vmatprep.subr.bf16.mxu0 %v909_v0 }
  0x6c   : > { %544 = vmatpush3.bf16.msra.mxu0 %v695_v6 }
  0x6d   : > { %545 = vmatprep.subr.bf16.mxu0 %v909_v0 }
  0x70   : > { %546 = vmatpush3.bf16.msra.mxu0 %v696_v7 }
  0x71   : > { %547 = vmatprep.subr.bf16.mxu0 %v909_v0 }
  0x74   : > { %548 = vmatpush3.bf16.msra.mxu0 %v697_v8 }
  0x77   : > { %550 = vmatmul.mubr.bf16.vlgmr.msra.gmra.mxu0 %v255_v10 }
 0x137   : > { %v361_v12 = vpop.f32.mrf.mxu0 }
 0x138   : > { %v362_v13 = vadd.f32 %v511_v11, %v361_v12 }
 0x139   : > { %v551_v14 = vpop.f32.mrf.mxu0 }
 0x13a   : > { %367 = vst [vmem:[%s249_s8] sm:$0xff] %v362_v13 }
 0x13b   : > { %v364_v15 = vpop.f32.mrf.mxu0 }
 0x13c   : > { %767 = shalt.err (!%p764_p10)
}
 0x13d   : > { %s768_s18 = scalar_lea.hbm %s1140_s29, 128  ;;  %s772_s23 = scalar_lea.hbm %s1219_s3, 768 }
 0x13e   : > { %p769_p0 = scmp.ne.s32.totalorder %s1140_s29, %s768_s18  ;;  %p773_p5 = scmp.lt.s32.totalorder %s1140_s29, %s1219_s3 }
 0x13f   : > { %p774_p11 = scmp.lt.s32.totalorder %s772_s23, %s768_s18 }
 0x140   : > { %p770_p1 = pnand %p769_p0, %p1248_p3 }
 0x141   : > { %p775_p8 = por %p774_p11, %p773_p5 }
 0x142   : > { %p771_p4 = pneg %p770_p1 }
 0x144   : > { %p776_p6 = pnand %p775_p8, %p771_p4 }
 0x146   : > { %779 = shalt.err (!%p776_p6)
}
 0x147   : > { %558 = dma.vmem_to_hbm [thread:$0]  (%p1248_p3), %s1142_s5, 128, %s1140_s29, %s369_s21   ;;  %v552_v16 = vpop.f32.mrf.mxu0 }
 0x148 PF: > { %p572_p12 = scmp.ge.s32.totalorder %s902_s25, 2  ;;  %s396_s26 = sand.u32 1, %s850_s12  }
 0x149   : > { %p1249_p7 = scmp.ne.s32.totalorder %s1242_s4, 0  ;;  %s397_s27 = scalar_lea.sflag [#allocation4], %s396_s26 }
 0x14b   : > { %p568_p13 = pnand %p572_p12, %p1249_p7 }
 0x14d   : > { %p569_p2 = pneg %p568_p13 }
 0x14f   : > { %845 = dma.done.wait (%p569_p2), %s397_s27, 128  }
 0x150   : > { %847 = vsyncadd (%p569_p2), %s397_s27, 4294967168  ;;  %s22_s25 = sadd.s32 1, %s902_s25   ;;  %s1251_s28 = sld [smem:[#allocation11_spill]] }
 0x151   : > { %p1169_p9 = scmp.ge.s32.totalorder %s22_s25, 8   ;;  %s1252_s14 = sld [smem:[#allocation18_spill]] }
 0x152   : > { %s1253_s8 = sld [smem:[#allocation17_spill]]  ;;  %s1259_s12 = smov %s854_s13 }
 0x153   : > { %s1254_s5 = sld [smem:[#allocation12_spill]]  ;;  %s1261_s15 = smov %s866_s16 }
 0x154   : > { %s1255_s20 = sld [smem:[#allocation16_spill]]  ;;  %s1262_s16 = smov %s870_s17 }
 0x155   : > { %s1256_s21 = sld [smem:[#allocation13_spill]]  ;;  %s1264_s18 = smov %s878_s19 }
 0x156   : > { %s1257_s23 = sld [smem:[#allocation14_spill]]  ;;  %s1260_s13 = smov %s1251_s28 }
 0x157   : > { %s1258_s4 = sld [smem:[#allocation15_spill]]  ;;  %s1266_s22 = smov %s898_s24 }
 0x158   : > { %s1263_s17 = smov %s1253_s8 }
 0x159   : > { %s1265_s19 = smov %s1254_s5  ;;  %21 = sbr.rel (!%p1169_p9) target bundleno = 14 (0xe), region = 93 }
 0x15d   : > { %s1267_s24 = smov %s1258_s4 }
 0x15e   :  { %402 = vsyncpa [#allocation3], 1 }
 0x15f   :  { %404 = vsyncpa [#allocation3 + $0x1], 1 }
 0x160   :  { %405 = vsyncpa [#allocation6], 1 }
 0x161   :  { %407 = vsyncpa [#allocation6 + $0x1], 1 }
 0x162   :  { %408 = vsyncpa [#allocation4], 1 }
 0x163   :  { %410 = vsyncpa [#allocation4 + $0x1], 1 }

</bundles_post_ra>
